<compile_context>
chip_gen: v5e
topology: v5e:2x2
jax: 0.10.0
libtpu: 0.0.40
codegen_flags: <defaults>
</compile_context>

<pallas_src>
import jax
import jax.numpy as jnp
from jax import lax
from jax.experimental import pallas as pl
from jax.experimental.pallas import tpu as pltpu

_MIB = 1024 * 1024
_VMEM_BUDGET = 28 * _MIB       # our double-buffered blocks must fit here (v7x-safe)
_VMEM_LIMIT = 48 * _MIB        # requested scoped limit: > v5e's 16 MiB default, < v7x 64 MiB phys
_RESIDENT_M_BYTES = 8 * _MIB   # max single-buffer size of the resident feature strip


def _cdiv(a, b):
    return -(-a // b)


def _round_up(x, m):
    return _cdiv(x, m) * m


def _plan_adj_tiles(n, dp, target):
    """Pick adjacency tile T and whether the feature strip stays VMEM-resident.

    Returns (T, resident, vmem_bytes_needed).  All blocks are f32 and
    double-buffered by the Pallas pipeline (factor 2 -> the 8x below).
    """
    for t in (1024, 512, 256, 128):
        if t > target or t > _round_up(n, 128):
            continue
        waste = _cdiv(n, t) * t - n
        if waste > t // 2 and t > 128:
            continue                      # too much wasted MXU/DMA on the ragged tail
        kext = _cdiv(n, t) * t
        resident_need = 8 * (t * t + kext * dp + t * dp)
        if kext * dp * 4 <= _RESIDENT_M_BYTES and resident_need <= _VMEM_BUDGET:
            return t, True, resident_need
        tiled_need = 8 * (t * t + 2 * t * dp)
        if tiled_need <= _VMEM_BUDGET:
            return t, False, tiled_need
    t = 128
    return t, False, 8 * (t * t + 2 * t * dp)


# --------------------------------------------------------------------------- #
# Kernel 1: tiled batched adjacency matmul  out[b] = adj[b] @ m[b]
# --------------------------------------------------------------------------- #
def _adj_matmul(adj, m, *, tile_target=512, compute_dtype=None):
    """adj: (B, N, N) unpadded; m: (B, N, Dp) with Dp a multiple of 128.

    Returns (B, N, Dp) float32.  Ragged N is handled with clipped boundary
    blocks + an in-kernel column mask (no HBM round trip to pad adj); m's rows
    are zero-padded to the contraction extent so boundary tiles contribute 0.
    """
    B, N, _ = adj.shape
    Dp = m.shape[-1]
    T, resident, _ = _plan_adj_tiles(N, Dp, tile_target)
    nk = _cdiv(N, T)
    kext = nk * T

    if m.shape[1] != kext:
        m = jnp.pad(m, ((0, 0), (0, kext - m.shape[1]), (0, 0)))
    if compute_dtype is not None:
        adj = adj.astype(compute_dtype)
        m = m.astype(compute_dtype)

    needs_mask = (N % T) != 0

    def kernel(adj_ref, m_ref, o_ref):
        k = pl.program_id(2)
        a = adj_ref[0]
        if needs_mask:
            # Zero adjacency columns past the valid node count so garbage read
            # in the clipped boundary block cannot pollute the accumulation
            # (the matching m rows are genuine zeros from the wrapper pad).
            col = k * T + lax.broadcasted_iota(jnp.int32, (T, T), 1)
            a = jnp.where(col < N, a, jnp.zeros_like(a))
        if resident:
            start = pl.multiple_of(k * T, T)
            rhs = m_ref[0, pl.ds(start, T), :]
        else:
            rhs = m_ref[0]
        partial = jnp.dot(a, rhs, preferred_element_type=jnp.float32)

        @pl.when(k == 0)
        def _init():
            o_ref[0] = partial

        @pl.when(k > 0)
        def _acc():
            o_ref[0] += partial

    if resident:
        # Whole per-batch feature strip held in VMEM; fetched once per batch b
        # (block index is constant over i and k), sliced in-kernel.
        m_spec = pl.BlockSpec((1, kext, Dp), lambda b, i, k: (b, 0, 0))
        m_hbm = B * kext * Dp * m.dtype.itemsize
    else:
        m_spec = pl.BlockSpec((1, T, Dp), lambda b, i, k: (b, k, 0))
        m_hbm = B * nk * kext * Dp * m.dtype.itemsize   # re-streamed per row tile

    flops = 2 * B * N * N * Dp
    bytes_accessed = adj.size * adj.dtype.itemsize + m_hbm + B * N * Dp * 4

    return pl.pallas_call(
        kernel,
        out_shape=jax.ShapeDtypeStruct((B, N, Dp), jnp.float32),
        grid_spec=pltpu.PrefetchScalarGridSpec(
            num_scalar_prefetch=0,
            grid=(B, nk, nk),
            in_specs=[
                pl.BlockSpec((1, T, T), lambda b, i, k: (b, i, k)),   # adj tile
                m_spec,                                               # feature operand
            ],
            out_specs=pl.BlockSpec((1, T, Dp), lambda b, i, k: (b, i, 0)),
        ),
        compiler_params=pltpu.CompilerParams(
            # b/i shard across cores where supported; k is the contraction axis.
            dimension_semantics=("parallel", "parallel", "arbitrary"),
            vmem_limit_bytes=_VMEM_LIMIT,
        ),
        cost_estimate=pl.CostEstimate(
            flops=flops, transcendentals=0, bytes_accessed=bytes_accessed
        ),
    )(adj, m)


# --------------------------------------------------------------------------- #
# Kernel 2: row-wise feature matmul  out = rows @ W   (rows = flattened B*N)
# --------------------------------------------------------------------------- #
def _feature_matmul_kernel(x_ref, w_ref, o_ref):
    o_ref[...] = jnp.dot(
        x_ref[...], w_ref[...], preferred_element_type=jnp.float32
    ).astype(o_ref.dtype)


def _feature_matmul(rows, w, *, tile_r=512):
    """rows: (R, Din), w: (Din, Dp) -> (R, Dp) float32. Dp is a multiple of 128."""
    R, Din = rows.shape
    Dp = w.shape[1]
    TR = max(128, (min(tile_r, 1024) // 128) * 128)
    while TR > 128 and (TR > _round_up(R, 8)
                        or 8 * (TR * Din + Din * Dp + TR * Dp) > _VMEM_BUDGET):
        TR = max(128, ((TR // 2) // 128) * 128)

    flops = 2 * R * Din * Dp
    bytes_accessed = 4 * (R * Din + Din * Dp + R * Dp)

    return pl.pallas_call(
        _feature_matmul_kernel,
        out_shape=jax.ShapeDtypeStruct((R, Dp), jnp.float32),
        grid_spec=pltpu.PrefetchScalarGridSpec(
            num_scalar_prefetch=0,
            grid=(_cdiv(R, TR),),
            in_specs=[
                pl.BlockSpec((TR, Din), lambda i: (i, 0)),
                pl.BlockSpec((Din, Dp), lambda i: (0, 0)),   # weight, fetched once
            ],
            out_specs=pl.BlockSpec((TR, Dp), lambda i: (i, 0)),
        ),
        compiler_params=pltpu.CompilerParams(
            dimension_semantics=("parallel",),
            vmem_limit_bytes=_VMEM_LIMIT,
        ),
        cost_estimate=pl.CostEstimate(
            flops=flops, transcendentals=0, bytes_accessed=bytes_accessed
        ),
    )(rows, w)


# --------------------------------------------------------------------------- #
# Public wrapper: y = adj @ x @ W (same semantics as the torch module forward)
# --------------------------------------------------------------------------- #
def graph_conv(x, adj, weight, *, tile_n=512, compute_dtype=None):
    B, N, Din = x.shape
    Din_w, Dout = weight.shape
    assert adj.shape == (B, N, N)
    assert Din_w == Din

    LANE = 128
    Dout_p = _round_up(Dout, LANE)

    if Dout <= Din:
        # Reassociate: y = adj @ (x @ W).  The big N^2 matmul contracts against
        # the smaller (padded) output feature dim.
        w_p = jnp.pad(weight, ((0, 0), (0, Dout_p - Dout)))
        xw = _feature_matmul(x.reshape(B * N, Din), w_p)          # (B*N, Dout_p)
        y = _adj_matmul(adj, xw.reshape(B, N, Dout_p),
                        tile_target=tile_n, compute_dtype=compute_dtype)
        return y[:, :, :Dout]
    else:
        # Same association as the torch module: y = (adj @ x) @ W.
        Din_p = _round_up(Din, LANE)
        x_p = jnp.pad(x, ((0, 0), (0, 0), (0, Din_p - Din)))       # cheap (small tensor)
        w_p = jnp.pad(weight, ((0, Din_p - Din), (0, Dout_p - Dout)))
        ax = _adj_matmul(adj, x_p, tile_target=tile_n,
                         compute_dtype=compute_dtype)              # (B, N, Din_p)
        y = _feature_matmul(ax.reshape(B * N, Din_p), w_p)         # (B*N, Dout_p)
        return y.reshape(B, N, Dout_p)[:, :, :Dout]


if __name__ == "__main__":
    key = jax.random.PRNGKey(0)

    # --- test 1: module-like tiny shapes, Dout > Din -> (adj @ x) @ W path
    B, N, D_in, D_out = 2, 16, 8, 32
    kx, ka, kw = jax.random.split(key, 3)
    x = jax.random.normal(kx, (B, N, D_in), dtype=jnp.float32)
    adj = jax.random.normal(ka, (B, N, N), dtype=jnp.float32)
    weight = jax.random.normal(kw, (D_in, D_out), dtype=jnp.float32) * 0.1

    y = graph_conv(x, adj, weight)
    jax.block_until_ready(y)
    y_ref = jnp.matmul(jnp.matmul(adj, x), weight)
    assert y.shape == (B, N, D_out)
    assert jnp.allclose(y, y_ref, atol=1e-4, rtol=1e-4)

    # --- test 2: ragged N (not multiple of 128), Dout <= Din -> adj @ (x @ W) path
    B2, N2, D_in2, D_out2 = 2, 130, 32, 8
    kx2, ka2, kw2 = jax.random.split(jax.random.PRNGKey(1), 3)
    x2 = jax.random.normal(kx2, (B2, N2, D_in2), dtype=jnp.float32)
    adj2 = jax.random.normal(ka2, (B2, N2, N2), dtype=jnp.float32)
    weight2 = jax.random.normal(kw2, (D_in2, D_out2), dtype=jnp.float32) * 0.1

    y2 = graph_conv(x2, adj2, weight2)
    jax.block_until_ready(y2)
    y2_ref = jnp.matmul(jnp.matmul(adj2, x2), weight2)
    assert y2.shape == (B2, N2, D_out2)
    assert jnp.allclose(y2, y2_ref, atol=1e-3, rtol=1e-3)

    # --- test 3: force multiple contraction tiles (k-accumulation into o_ref)
    #             plus ragged tail masking, via a small tile_n.
    B3, N3, D_in3, D_out3 = 2, 200, 16, 8
    kx3, ka3, kw3 = jax.random.split(jax.random.PRNGKey(2), 3)
    x3 = jax.random.normal(kx3, (B3, N3, D_in3), dtype=jnp.float32)
    adj3 = jax.random.normal(ka3, (B3, N3, N3), dtype=jnp.float32)
    weight3 = jax.random.normal(kw3, (D_in3, D_out3), dtype=jnp.float32) * 0.1

    y3 = graph_conv(x3, adj3, weight3, tile_n=128)
    jax.block_until_ready(y3)
    y3_ref = jnp.matmul(jnp.matmul(adj3, x3), weight3)
    assert y3.shape == (B3, N3, D_out3)
    assert jnp.allclose(y3, y3_ref, atol=1e-3, rtol=1e-3)

    print("KERNEL_OK")
</pallas_src>

<mosaic_0001>
module attributes {stable_mosaic.version = 11 : i64} {
  func.func @kernel(%arg0: i32, %arg1: i32, %arg2: i32, %arg3: memref<1x128x128xf32, #tpu.memory_space<vmem>>, %arg4: memref<1x128x128xf32, #tpu.memory_space<vmem>>, %arg5: memref<1x128x128xf32, #tpu.memory_space<vmem>>) attributes {dimension_semantics = [#tpu.dimension_semantics<parallel>, #tpu.dimension_semantics<parallel>, #tpu.dimension_semantics<arbitrary>], iteration_bounds = array<i64: 2, 1, 1>, scalar_prefetch = 0 : i64, scratch_operands = 0 : i64, tpu.core_type = #tpu.core_type<tc>, window_params = [{transform_indices = @transform_0, window_bounds = array<i64: 1, 128, 128>}, {transform_indices = @transform_1, window_bounds = array<i64: 1, 128, 128>}, {transform_indices = @transform_2, window_bounds = array<i64: 1, 128, 128>}]} {
    %c0 = arith.constant 0 : index
    %c0_0 = arith.constant 0 : index
    %c0_1 = arith.constant 0 : index
    %0 = vector.load %arg3[%c0, %c0_0, %c0_1] : memref<1x128x128xf32, #tpu.memory_space<vmem>>, vector<1x128x128xf32>
    %1 = vector.shape_cast %0 : vector<1x128x128xf32> to vector<128x128xf32>
    %c128_i32 = arith.constant 128 : i32
    %2 = arith.muli %arg2, %c128_i32 : i32
    %3 = tpu.iota {dimensions = array<i32: 1>} : vector<128x128xi32>
    %4 = vector.broadcast %2 : i32 to vector<128x128xi32>
    %5 = arith.addi %4, %3 : vector<128x128xi32>
    %c16_i32 = arith.constant 16 : i32
    %6 = vector.broadcast %c16_i32 : i32 to vector<128x128xi32>
    %7 = arith.cmpi slt, %5, %6 : vector<128x128xi32>
    %cst = arith.constant 0.000000e+00 : f32
    %8 = vector.broadcast %cst : f32 to vector<128x128xf32>
    %9 = arith.select %7, %1, %8 : vector<128x128xi1>, vector<128x128xf32>
    %c128_i32_2 = arith.constant 128 : i32
    %10 = arith.muli %arg2, %c128_i32_2 : i32
    %11 = tpu.assume_multiple %10, 128 : i32
    %c0_3 = arith.constant 0 : index
    %12 = arith.index_cast %11 : i32 to index
    %c0_4 = arith.constant 0 : index
    %13 = vector.load %arg4[%c0_3, %12, %c0_4] : memref<1x128x128xf32, #tpu.memory_space<vmem>>, vector<1x128x128xf32>
    %14 = vector.shape_cast %13 : vector<1x128x128xf32> to vector<128x128xf32>
    %cst_5 = arith.constant dense<0.000000e+00> : vector<128x128xf32>
    %15 = tpu.matmul %9, %14, %cst_5 {dimension_numbers = #tpu.dot_dimension_numbers<[1], [0], [0], [1], [0, 0, 1, 1], [], []>} : vector<128x128xf32>, vector<128x128xf32>, vector<128x128xf32> -> vector<128x128xf32>
    %c0_i32 = arith.constant 0 : i32
    %16 = arith.cmpi eq, %arg2, %c0_i32 : i32
    %17 = arith.extui %16 : i1 to i32
    %c0_i32_6 = arith.constant 0 : i32
    %18 = arith.cmpi ne, %17, %c0_i32_6 : i32
    scf.if %18 {
      %c0_9 = arith.constant 0 : index
      %c0_10 = arith.constant 0 : index
      %c0_11 = arith.constant 0 : index
      %22 = vector.load %arg5[%c0_9, %c0_10, %c0_11] : memref<1x128x128xf32, #tpu.memory_space<vmem>>, vector<1x128x128xf32>
      %23 = vector.shape_cast %22 : vector<1x128x128xf32> to vector<128x128xf32>
      %24 = vector.shape_cast %15 : vector<128x128xf32> to vector<1x128x128xf32>
      tpu.vector_store %arg5[%c0_9, %c0_10, %c0_11], %24 {strides = array<i32>} : memref<1x128x128xf32, #tpu.memory_space<vmem>>, vector<1x128x128xf32>,
    } else {
    }
    %c0_i32_7 = arith.constant 0 : i32
    %19 = arith.cmpi sgt, %arg2, %c0_i32_7 : i32
    %20 = arith.extui %19 : i1 to i32
    %c0_i32_8 = arith.constant 0 : i32
    %21 = arith.cmpi ne, %20, %c0_i32_8 : i32
    scf.if %21 {
      %c0_9 = arith.constant 0 : index
      %c0_10 = arith.constant 0 : index
      %c0_11 = arith.constant 0 : index
      %22 = vector.load %arg5[%c0_9, %c0_10, %c0_11] : memref<1x128x128xf32, #tpu.memory_space<vmem>>, vector<1x128x128xf32>
      %23 = vector.shape_cast %22 : vector<1x128x128xf32> to vector<128x128xf32>
      %24 = arith.addf %23, %15 : vector<128x128xf32>
      %c0_12 = arith.constant 0 : index
      %c0_13 = arith.constant 0 : index
      %c0_14 = arith.constant 0 : index
      %25 = vector.load %arg5[%c0_12, %c0_13, %c0_14] : memref<1x128x128xf32, #tpu.memory_space<vmem>>, vector<1x128x128xf32>
      %26 = vector.shape_cast %25 : vector<1x128x128xf32> to vector<128x128xf32>
      %27 = vector.shape_cast %24 : vector<128x128xf32> to vector<1x128x128xf32>
      tpu.vector_store %arg5[%c0_12, %c0_13, %c0_14], %27 {strides = array<i32>} : memref<1x128x128xf32, #tpu.memory_space<vmem>>, vector<1x128x128xf32>,
    } else {
    }
    return
  }
  func.func @transform_0(%arg0: i32, %arg1: i32, %arg2: i32) -> (i32, i32, i32) {
    %c0_i32 = arith.constant 0 : i32
    return %arg0, %arg1, %arg2 : i32, i32, i32
  }
  func.func @transform_1(%arg0: i32, %arg1: i32, %arg2: i32) -> (i32, i32, i32) {
    %c0_i32 = arith.constant 0 : i32
    %c0_i32_0 = arith.constant 0 : i32
    %c0_i32_1 = arith.constant 0 : i32
    return %arg0, %c0_i32, %c0_i32_0 : i32, i32, i32
  }
  func.func @transform_2(%arg0: i32, %arg1: i32, %arg2: i32) -> (i32, i32, i32) {
    %c0_i32 = arith.constant 0 : i32
    %c0_i32_0 = arith.constant 0 : i32
    return %arg0, %arg1, %c0_i32 : i32, i32, i32
  }
}

</mosaic_0001>

<bundles_post_ra>
// kernel: tpu_custom_call.1
= control target key start
LH: loop header
LB: loop body
LE: loop exit
PB: predicated region body
PF: predicated region fallthrough
CT: control target
= control target key end

     0   :  { %s1089_s0 = inlined_call_operand.hbm [shape: f32[2,16,16], index: 0, kind: input, shape index: {}]   ;;  %s1090_s1 = inlined_call_operand.hbm [shape: f32[2,128,128], index: 1, kind: input, shape index: {}]   ;;  %s1091_s2 = inlined_call_operand.hbm [shape: f32[2,16,128], index: 2, kind: output, shape index: {}]  }
   0x1   :  { %1092 = sst [smem:[#allocation11_spill]] %s1089_s0 }
   0x2   :  { %7 = vsyncpa [#allocation3], 0 }
   0x3   :  { %9 = vsyncpa [#allocation3 + $0x1], 0 }
   0x4   :  { %10 = vsyncpa [#allocation6], 0 }
   0x5   :  { %12 = vsyncpa [#allocation6 + $0x1], 0 }
   0x6   :  { %13 = vsyncpa [#allocation4], 0 }
   0x7   :  { %15 = vsyncpa [#allocation4 + $0x1], 0  ;;  %s882_s9 = smov 0   ;;  %s884_s10 = smov 0  }
   0x8   :  { %s886_s11 = smov 0   ;;  %s888_s12 = smov 0  }
   0x9   :  { %s890_s13 = smov 0   ;;  %s892_s14 = smov 0  }
   0xa LB: > { %s576_s15 = sadd.s32 4294967295, %s859_s14   ;;  %s577_s16 = sadd.s32 4294967294, %s859_s14   ;;  %s859_s14 = sphi %s892_s14, %s21_s14   ;;  %s855_s13 = sphi %s890_s13, %s1102_s13   ;;  %s851_s12 = sphi %s888_s12, %s1101_s12   ;;  %s847_s11 = sphi %s886_s11, %s1100_s11   ;;  %s843_s10 = sphi %s884_s10, %s1099_s10   ;;  %s839_s9 = sphi %s882_s9, %s1098_s9  }
   0xb   : > { %s40_s17 = sadd.s32 1, %s855_s13  ;;  %s51_s18 = sadd.s32 1, %s847_s11 }
   0xc   : > { %p42_p0 = scmp.ge.s32.totalorder %s40_s17, 2  ;;  %p58_p1 = scmp.ne.s32.totalorder %s847_s11, %s843_s10 }
   0xd   : > { %p59_p2 = scmp.eq.s32.totalorder %s859_s14, 0  ;;  %p64_p3 = scmp.ne.s32.totalorder %s843_s10, %s839_s9 }
   0xe   : > { %s1104_s17 = smov (%p42_p0, %s40_s17), 0  ;;  %p65_p5 = scmp.eq.s32.totalorder %s576_s15, 0 }
   0xf   : > { %p923_p4 = por %p59_p2, %p58_p1  ;;  %s44_s20 = ssub.s32 %s855_s13, %s1104_s17 }
  0x10   : > { %p116_p6 = scmp.eq.s32.totalorder %s576_s15, 1  ;;  %p49_p7 = scmp.eq.s32.totalorder %s44_s20, 0 }
  0x11   : > { %p929_p8 = por %p65_p5, %p64_p3  ;;  %p122_p10 = scmp.eq.s32.totalorder %s577_s16, 1 }
  0x12   : > { %p933_p9 = por %p116_p6, %p58_p1  ;;  %p579_p12 = scmp.ge.s32.totalorder %s859_s14, 2 }
  0x13   : > { %s938_s23 = scalar_select %p49_p7, %s847_s11, %s51_s18  }
  0x14   : > { %p940_p11 = por %p122_p10, %p64_p3  ;;  %138 = sbr.rel (%p579_p12) target bundleno = 46 (0x2e), region = 16 }
  0x19   : > { %141 = sbr.rel (!%p923_p4) target bundleno = 40 (0x28), region = 20  ;;  %s142_s25 = sand.u32 (%p923_p4), 1, %s847_s11  }
  0x1a   : > { %s580_s26 = sshll.u32 (%p923_p4), %s142_s25, 7  ;;  %s143_s27 = scalar_lea.sflag (%p923_p4), [#allocation3], %s142_s25 }
  0x1b   : > { %s146_s28 = scalar_lea.vmem (%p923_p4), [#allocation2], %s580_s26 }
  0x1e   : > { %152 = vsyncadd %s143_s27, 1792  ;;  %s611_s29 = sshll.u32 %s855_s13, 4  ;;  %s162_s30 = sshll.u32 %s146_s28, 4  ;;  %s163_s30 = int_to_ptr.vmem [resolvable:$true] %s162_s30 }
  0x1f   : > { %s1097_s0 = sld [smem:[#allocation11_spill]]  ;;  %s861_s7 = smov 128  }
  0x20   : > { %s862_s8 = smov 8  }
  0x25   : > { %s158_s5 = scalar_lea.hbm %s1097_s0, %s611_s29 }
  0x26   : > { %s160_s6 = sshll.u32 %s158_s5, 4  ;;  %s161_s6 = int_to_ptr.hbm [resolvable:$true] %s160_s6 }
  0x27   : > { %168 = dma.hbm_to_vmem [thread:$0]  %s161_s6, 256, %s163_s30, %s143_s27, %s861_s7, %s861_s7, %s862_s8  }
  0x28 PF: > { %s172_s15 = sand.u32 1, %s847_s11   ;;  %s612_s16 = sshll.u32 %s855_s13, 7 }
  0x29   : > { %s583_s18 = sshll.u32 %s172_s15, 7  ;;  %s181_s26 = scalar_lea.hbm %s1090_s1, %s612_s16 }
  0x2a   : > { %s182_s28 = sshll.u32 %s181_s26, 4  ;;  %s176_s3 = scalar_lea.vmem [#allocation5], %s583_s18  ;;  %s183_s28 = int_to_ptr.hbm [resolvable:$true] %s182_s28 }
  0x2b   : > { %s184_s29 = sshll.u32 %s176_s3, 4  ;;  %s173_s4 = scalar_lea.sflag [#allocation6], %s172_s15  ;;  %s185_s29 = int_to_ptr.vmem [resolvable:$true] %s184_s29 }
  0x2c   : > { %s863_s5 = smov 128   ;;  %s864_s0 = smov 8  }
  0x2d   : > { %662 = dma.hbm_to_vmem [thread:$0]  (%p923_p4), %s183_s28, 2048, %s185_s29, %s173_s4, %s863_s5, %s863_s5, %s864_s0  }
  0x2e PF: > { %p586_p13 = scmp.ge.s32.totalorder %s859_s14, 1  ;;  %p192_p0 = scmp.lt.s32.totalorder %s859_s14, 3 }
  0x30   : > { %p193_p1 = pnand %p586_p13, %p192_p0 }
  0x31   : > { %s964_s27 = sand.u32 (!%p193_p1), 1, %s843_s10  }
  0x32   : > { %196 = sbr.rel (%p193_p1) target bundleno = 262 (0x106), region = 28  ;;  %s967_s30 = sshll.u32 (!%p193_p1), %s964_s27, 7 }
  0x33   : > { %s199_s6 = scalar_lea.sflag (!%p193_p1), [#allocation3], %s964_s27  ;;  %s971_s7 = scalar_lea.vmem (!%p193_p1), [#allocation2], %s967_s30 }
  0x37   : > { %826 = dma.done.wait (%p929_p8), %s199_s6, 2048  }
  0x38   : > { %828 = vsyncadd (%p929_p8), %s199_s6, 4294965248  ;;  %s209_s0 = scalar_lea.sflag [#allocation6], %s964_s27  ;;  %s979_s19 = scalar_lea.vmem [#allocation5], %s967_s30 }
  0x39   : > { %830 = dma.done.wait (%p929_p8), %s209_s0, 2048  }
  0x3a   : > { %832 = vsyncadd (%p929_p8), %s209_s0, 4294965248  ;;  %v299_v0 = vld [vmem:[%s979_s19 + $0x78] sm:$0xff]  ;;  %v298_v1 = vld [vmem:[%s979_s19 + $0x70] sm:$0xff]  ;;  %v262_v12 = vlaneseq  ;;  %s1034_s21 = scalar_lea.vmem [#allocation7], %s967_s30  ;;  %s438_s8 = scalar_lea.sflag [#allocation4], %s964_s27 }
  0x3b   : > { %615 = vmatpush.msra.mxu2 %v299_v0  ;;  %616 = vmatpush.msra.mxu3 %v299_v0  ;;  %v297_v2 = vld [vmem:[%s979_s19 + $0x68] sm:$0xff]  ;;  %v296_v3 = vld [vmem:[%s979_s19 + $0x60] sm:$0xff]  ;;  %v295_v4 = vld [vmem:[%s979_s19 + $0x58] sm:$0xff] }
  0x3c   : > { %300 = vmatpush.msra.mxu0 %v299_v0  ;;  %614 = vmatpush.msra.mxu1 %v299_v0  ;;  %v294_v5 = vld [vmem:[%s979_s19 + $0x50] sm:$0xff]  ;;  %v293_v6 = vld [vmem:[%s979_s19 + $0x48] sm:$0xff]  ;;  %v292_v7 = vld [vmem:[%s979_s19 + $0x40] sm:$0xff]  ;;  %v263_v15 = vand.u32 127, %v262_v12 }
  0x3d   : > { %618 = vmatpush.msra.mxu2 %v298_v1  ;;  %619 = vmatpush.msra.mxu3 %v298_v1  ;;  %v291_v8 = vld [vmem:[%s979_s19 + $0x38] sm:$0xff]  ;;  %v290_v9 = vld [vmem:[%s979_s19 + $0x30] sm:$0xff]  ;;  %v289_v10 = vld [vmem:[%s979_s19 + $0x28] sm:$0xff] }
  0x3e   : > { %301 = vmatpush.msra.mxu0 %v298_v1  ;;  %617 = vmatpush.msra.mxu1 %v298_v1  ;;  %v288_v11 = vld [vmem:[%s979_s19 + $0x20] sm:$0xff]  ;;  %v287_v13 = vld [vmem:[%s979_s19 + $0x18] sm:$0xff]  ;;  %v286_v14 = vld [vmem:[%s979_s19 + $0x10] sm:$0xff]  ;;  %vm266_vm0 = vcmp.lt.s32.totalorder %v263_v15, 16 }
  0x3f   : > { %621 = vmatpush.msra.mxu2 %v297_v2  ;;  %622 = vmatpush.msra.mxu3 %v297_v2  ;;  %v285_v16 = vld [vmem:[%s979_s19 + $0x8] sm:$0xff]  ;;  %v284_v17 = vld [vmem:[%s979_s19] sm:$0xff]  ;;  %v255_v26 = vld [vmem:[%s971_s7 + $0x50] sm:$0xff] }
  0x40   : > { %302 = vmatpush.msra.mxu0 %v297_v2  ;;  %620 = vmatpush.msra.mxu1 %v297_v2  ;;  %v253_v18 = vld [vmem:[%s971_s7 + $0x40] sm:$0xff]  ;;  %v254_v22 = vld [vmem:[%s971_s7 + $0x48] sm:$0xff]  ;;  %v259_v27 = vld [vmem:[%s971_s7 + $0x70] sm:$0xff] }
  0x41   : > { %624 = vmatpush.msra.mxu2 %v296_v3  ;;  %625 = vmatpush.msra.mxu3 %v296_v3  ;;  %v257_v19 = vld [vmem:[%s971_s7 + $0x60] sm:$0xff]  ;;  %v258_v23 = vld [vmem:[%s971_s7 + $0x68] sm:$0xff]  ;;  %v247_v28 = vld [vmem:[%s971_s7 + $0x10] sm:$0xff] }
  0x42   : > { %303 = vmatpush.msra.mxu0 %v296_v3  ;;  %623 = vmatpush.msra.mxu1 %v296_v3  ;;  %v245_v20 = vld [vmem:[%s971_s7] sm:$0xff]  ;;  %v246_v24 = vld [vmem:[%s971_s7 + $0x8] sm:$0xff]  ;;  %v251_v29 = vld [vmem:[%s971_s7 + $0x30] sm:$0xff] }
  0x43   : > { %627 = vmatpush.msra.mxu2 %v295_v4  ;;  %628 = vmatpush.msra.mxu3 %v295_v4  ;;  %v249_v21 = vld [vmem:[%s971_s7 + $0x20] sm:$0xff]  ;;  %v250_v25 = vld [vmem:[%s971_s7 + $0x28] sm:$0xff]  ;;  %v256_v30 = vld [vmem:[%s971_s7 + $0x58] sm:$0xff] }
  0x44   : > { %304 = vmatpush.msra.mxu0 %v295_v4  ;;  %626 = vmatpush.msra.mxu1 %v295_v4  ;;  %v260_v31 = vld [vmem:[%s971_s7 + $0x78] sm:$0xff] }
  0x45   : > { %630 = vmatpush.msra.mxu2 %v294_v5  ;;  %631 = vmatpush.msra.mxu3 %v294_v5  ;;  %v248_v32 = vld [vmem:[%s971_s7 + $0x18] sm:$0xff] }
  0x46   : > { %305 = vmatpush.msra.mxu0 %v294_v5  ;;  %629 = vmatpush.msra.mxu1 %v294_v5  ;;  %v252_v33 = vld [vmem:[%s971_s7 + $0x38] sm:$0xff] }
  0x47   : > { %633 = vmatpush.msra.mxu2 %v293_v6  ;;  %634 = vmatpush.msra.mxu3 %v293_v6 }
  0x48   : > { %306 = vmatpush.msra.mxu0 %v293_v6  ;;  %632 = vmatpush.msra.mxu1 %v293_v6 }
  0x49   : > { %636 = vmatpush.msra.mxu2 %v292_v7  ;;  %637 = vmatpush.msra.mxu3 %v292_v7 }
  0x4a   : > { %307 = vmatpush.msra.mxu0 %v292_v7  ;;  %635 = vmatpush.msra.mxu1 %v292_v7 }
  0x4b   : > { %639 = vmatpush.msra.mxu2 %v291_v8  ;;  %640 = vmatpush.msra.mxu3 %v291_v8 }
  0x4c   : > { %308 = vmatpush.msra.mxu0 %v291_v8  ;;  %638 = vmatpush.msra.mxu1 %v291_v8 }
  0x4d   : > { %642 = vmatpush.msra.mxu2 %v290_v9  ;;  %643 = vmatpush.msra.mxu3 %v290_v9 }
  0x4e   : > { %309 = vmatpush.msra.mxu0 %v290_v9  ;;  %641 = vmatpush.msra.mxu1 %v290_v9 }
  0x4f   : > { %645 = vmatpush.msra.mxu2 %v289_v10  ;;  %646 = vmatpush.msra.mxu3 %v289_v10 }
  0x50   : > { %310 = vmatpush.msra.mxu0 %v289_v10  ;;  %644 = vmatpush.msra.mxu1 %v289_v10 }
  0x51   : > { %648 = vmatpush.msra.mxu2 %v288_v11  ;;  %649 = vmatpush.msra.mxu3 %v288_v11 }
  0x52   : > { %311 = vmatpush.msra.mxu0 %v288_v11  ;;  %647 = vmatpush.msra.mxu1 %v288_v11 }
  0x53   : > { %651 = vmatpush.msra.mxu2 %v287_v13  ;;  %652 = vmatpush.msra.mxu3 %v287_v13 }
  0x54   : > { %312 = vmatpush.msra.mxu0 %v287_v13  ;;  %650 = vmatpush.msra.mxu1 %v287_v13 }
  0x55   : > { %654 = vmatpush.msra.mxu2 %v286_v14  ;;  %655 = vmatpush.msra.mxu3 %v286_v14 }
  0x56   : > { %313 = vmatpush.msra.mxu0 %v286_v14  ;;  %653 = vmatpush.msra.mxu1 %v286_v14 }
  0x57   : > { %657 = vmatpush.msra.mxu2 %v285_v16  ;;  %658 = vmatpush.msra.mxu3 %v285_v16 }
  0x58   : > { %314 = vmatpush.msra.mxu0 %v285_v16  ;;  %656 = vmatpush.msra.mxu1 %v285_v16 }
  0x59   : > { %660 = vmatpush.msra.mxu2 %v284_v17  ;;  %661 = vmatpush.msra.mxu3 %v284_v17 }
  0x5a   : > { %598 = vmatmul.msk.f32.vlgmr.msra.gmra.mxu2 %vm266_vm0, %v253_v18  ;;  %602 = vmatmul.msk.f32.vlgmr.msra.gmra.mxu3 %vm266_vm0, %v257_v19 }
  0x5b   : > { %315 = vmatpush.msra.mxu0 %v284_v17  ;;  %659 = vmatpush.msra.mxu1 %v284_v17 }
  0x5c   : > { %590 = vmatmul.msk.f32.vlgmr.msra.gmra.mxu0 %vm266_vm0, %v245_v20  ;;  %594 = vmatmul.msk.f32.vlgmr.msra.gmra.mxu1 %vm266_vm0, %v249_v21 }
  0x62   : > { %599 = vmatmul.msk.f32.gmra.mxu2 %vm266_vm0, %v254_v22  ;;  %603 = vmatmul.msk.f32.gmra.mxu3 %vm266_vm0, %v258_v23 }
  0x64   : > { %591 = vmatmul.msk.f32.gmra.mxu0 %vm266_vm0, %v246_v24  ;;  %595 = vmatmul.msk.f32.gmra.mxu1 %vm266_vm0, %v250_v25 }
  0x6a   : > { %600 = vmatmul.msk.f32.gmra.mxu2 %vm266_vm0, %v255_v26  ;;  %604 = vmatmul.msk.f32.gmra.mxu3 %vm266_vm0, %v259_v27 }
  0x6c   : > { %592 = vmatmul.msk.f32.gmra.mxu0 %vm266_vm0, %v247_v28  ;;  %596 = vmatmul.msk.f32.gmra.mxu1 %vm266_vm0, %v251_v29 }
  0x72   : > { %601 = vmatmul.msk.f32.gmra.mxu2 %vm266_vm0, %v256_v30  ;;  %605 = vmatmul.msk.f32.gmra.mxu3 %vm266_vm0, %v260_v31 }
  0x74   : > { %593 = vmatmul.msk.f32.gmra.mxu0 %vm266_vm0, %v248_v32  ;;  %597 = vmatmul.msk.f32.gmra.mxu1 %vm266_vm0, %v252_v33 }
  0xd9   : > { %v317_v34 = vpop.f32.mrf.mxu0  ;;  %v329_v35 = vpop.f32.mrf.mxu1 }
  0xda   : > { %369 = vst [vmem:[%s1034_s21] sm:$0xff] %v317_v34 }
  0xdb   : > { %373 = vst [vmem:[%s1034_s21 + $0x20] sm:$0xff] %v329_v35 }
  0xdd   : > { %v341_v36 = vpop.f32.mrf.mxu2  ;;  %v353_v37 = vpop.f32.mrf.mxu3 }
  0xde   : > { %377 = vst [vmem:[%s1034_s21 + $0x40] sm:$0xff] %v341_v36 }
  0xdf   : > { %381 = vst [vmem:[%s1034_s21 + $0x60] sm:$0xff] %v353_v37 }
  0xe1   : > { %v320_v38 = vpop.f32.mrf.mxu0  ;;  %v332_v39 = vpop.f32.mrf.mxu1 }
  0xe2   : > { %370 = vst [vmem:[%s1034_s21 + $0x8] sm:$0xff] %v320_v38 }
  0xe3   : > { %374 = vst [vmem:[%s1034_s21 + $0x28] sm:$0xff] %v332_v39 }
  0xe5   : > { %v344_v40 = vpop.f32.mrf.mxu2  ;;  %v356_v41 = vpop.f32.mrf.mxu3 }
  0xe6   : > { %378 = vst [vmem:[%s1034_s21 + $0x48] sm:$0xff] %v344_v40 }
  0xe7   : > { %382 = vst [vmem:[%s1034_s21 + $0x68] sm:$0xff] %v356_v41 }
  0xe9   : > { %v323_v42 = vpop.f32.mrf.mxu0  ;;  %v335_v43 = vpop.f32.mrf.mxu1 }
  0xea   : > { %371 = vst [vmem:[%s1034_s21 + $0x10] sm:$0xff] %v323_v42 }
  0xeb   : > { %375 = vst [vmem:[%s1034_s21 + $0x30] sm:$0xff] %v335_v43 }
  0xed   : > { %v347_v44 = vpop.f32.mrf.mxu2  ;;  %v359_v45 = vpop.f32.mrf.mxu3 }
  0xee   : > { %379 = vst [vmem:[%s1034_s21 + $0x50] sm:$0xff] %v347_v44 }
  0xef   : > { %383 = vst [vmem:[%s1034_s21 + $0x70] sm:$0xff] %v359_v45 }
  0xf1   : > { %v326_v46 = vpop.f32.mrf.mxu0  ;;  %v338_v47 = vpop.f32.mrf.mxu1 }
  0xf2   : > { %372 = vst [vmem:[%s1034_s21 + $0x18] sm:$0xff] %v326_v46 }
  0xf3   : > { %376 = vst [vmem:[%s1034_s21 + $0x38] sm:$0xff] %v338_v47  ;;  %444 = sbr.rel (!%p933_p9) target bundleno = 262 (0x106), region = 48 }
  0xf5   : > { %v350_v48 = vpop.f32.mrf.mxu2  ;;  %v362_v49 = vpop.f32.mrf.mxu3 }
  0xf6   : > { %380 = vst [vmem:[%s1034_s21 + $0x58] sm:$0xff] %v350_v48 }
  0xf7   : > { %384 = vst [vmem:[%s1034_s21 + $0x78] sm:$0xff] %v362_v49 }
  0xf8   : > { %450 = vsyncadd %s438_s8, 1792  ;;  %s613_s15 = sshll.u32 %s851_s12, 4  ;;  %s457_s16 = sshll.u32 %s1034_s21, 4  ;;  %s458_s16 = int_to_ptr.vmem [resolvable:$true] %s457_s16 }
  0xf9   : > { %s455_s25 = scalar_lea.hbm %s1091_s2, %s613_s15  ;;  %s793_s22 = scalar_lea.hbm %s1091_s2, 32 }
  0xfa   : > { %s459_s26 = sshll.u32 %s455_s25, 4  ;;  %s460_s26 = int_to_ptr.hbm [resolvable:$true] %s459_s26 }
  0xfb   : > { %s789_s28 = sshra.s32 %s460_s26, 4  ;;  %s790_s28 = int_to_ptr.hbm [resolvable:$true] %s789_s28 }
  0xfc   : > { %s791_s3 = scalar_lea.hbm %s790_s28, 16  ;;  %p794_p3 = scmp.lt.s32.totalorder %s790_s28, %s1091_s2 }
  0xfd   : > { %p792_p2 = scmp.ne.s32.totalorder %s790_s28, %s791_s3  ;;  %p795_p4 = scmp.lt.s32.totalorder %s793_s22, %s791_s3 }
  0xff   : > { %p796_p5 = por %p795_p4, %p794_p3 }
 0x101   : > { %p797_p6 = pnand %p796_p5, %p792_p2 }
 0x103   : > { %800 = shalt.err (!%p797_p6)
}
 0x104   : > { %s865_s12 = smov 128   ;;  %s866_s30 = smov 8  }
 0x105   : > { %465 = dma.vmem_to_hbm [thread:$0]  %s458_s16, 256, %s460_s26, %s438_s8, %s865_s12, %s865_s12, %s866_s30  }
 0x106 PF: > { %s474_s6 = sand.u32 1, %s839_s9   ;;  %p667_p7 = pnand %p579_p12, %p940_p11 }
 0x107   : > { %s475_s7 = scalar_lea.sflag [#allocation4], %s474_s6 }
 0x108   : > { %p668_p8 = pneg %p667_p7 }
 0x10a   : > { %834 = dma.done.wait (%p668_p8), %s475_s7, 2048  }
 0x10b   : > { %836 = vsyncadd (%p668_p8), %s475_s7, 4294965248  ;;  %s21_s14 = sadd.s32 1, %s859_s14   ;;  %s1098_s9 = smov %s843_s10 }
 0x10c   : > { %p18_p9 = scmp.ge.s32.totalorder %s21_s14, 4   ;;  %s1099_s10 = smov %s847_s11 }
 0x10d   : > { %s1100_s11 = smov %s938_s23  ;;  %s1101_s12 = smov %s855_s13 }
 0x10e   : > { %s1102_s13 = smov %s1104_s17  ;;  %20 = sbr.rel (!%p18_p9) target bundleno = 10 (0xa), region = 95 }
 0x113   :  { %481 = vsyncpa [#allocation3], 1 }
 0x114   :  { %483 = vsyncpa [#allocation3 + $0x1], 1 }
 0x115   :  { %484 = vsyncpa [#allocation6], 1 }
 0x116   :  { %486 = vsyncpa [#allocation6 + $0x1], 1 }
 0x117   :  { %487 = vsyncpa [#allocation4], 1 }
 0x118   :  { %489 = vsyncpa [#allocation4 + $0x1], 1 }

</bundles_post_ra>
